<compile_context>
chip_gen: v7x
topology: tpu7x:2x2x1
jax: 0.10.0
libtpu: 0.0.40
codegen_flags: <defaults>
</compile_context>

<pallas_src>
import functools

import jax
import jax.numpy as jnp
from jax import lax
from jax.experimental import pallas as pl
from jax.experimental.pallas import tpu as pltpu


# -----------------------------------------------------------------------------
# Pallas kernels
# -----------------------------------------------------------------------------
def _matmul_affine_kernel(x_ref, w_ref, scale_ref, shift_ref, o_ref, *, act):
    # x: (TM, K) bf16   w: (K, N) bf16 (VMEM-resident)   scale/shift: (1, N) f32
    y = jnp.dot(x_ref[...], w_ref[...], preferred_element_type=jnp.float32)
    y = y * scale_ref[...] + shift_ref[...]
    if act == "relu":
        y = jnp.maximum(y, 0.0)
    o_ref[...] = y.astype(o_ref.dtype)


def _matmul_affine_proj_kernel(x_ref, w1_ref, scale_ref, shift_ref,
                               w2_ref, b2_ref, o_ref):
    # conv3 + BN + ReLU + fc3(1x1) fused:  o = relu((x@w1)*scale+shift) @ w2 + b2
    y = jnp.dot(x_ref[...], w1_ref[...], preferred_element_type=jnp.float32)
    y = jnp.maximum(y * scale_ref[...] + shift_ref[...], 0.0)
    z = jnp.dot(y.astype(w2_ref.dtype), w2_ref[...],
                preferred_element_type=jnp.float32)
    o_ref[...] = (z + b2_ref[...]).astype(o_ref.dtype)


def _maxpool_phase_kernel(p_ref, o_ref, *, ho, wo):
    # p: (4, hp, wp, C) space-to-depth phases of the padded input (phase
    # index = (row_parity)*2 + col_parity).  Tap (ky,kx) of the 3x3/stride-2
    # window is an UNSTRIDED shifted view of one phase -> pure VPU max chain.
    r = None
    for ky in range(3):
        for kx in range(3):
            ph = (ky % 2) * 2 + (kx % 2)
            v = p_ref[ph, ky // 2:ky // 2 + ho, kx // 2:kx // 2 + wo, :]
            r = v if r is None else jnp.maximum(r, v)
    o_ref[...] = r


# -----------------------------------------------------------------------------
# Pallas wrappers
# -----------------------------------------------------------------------------
def _pick_tile(m, cap=1024):
    """Largest TM <= cap, multiple of 8; prefer a divisor of m (no pad copy)."""
    if m <= cap:
        mp = -(-m // 8) * 8
        return mp, mp
    for d in range(cap - cap % 8, 7, -8):
        if m % d == 0:
            return d, m
    mp = -(-m // cap) * cap
    return cap, mp


def matmul_affine(x, w, scale, shift, *, act, out_dtype, tm_cap=1024):
    """out[b] = act((x[b] @ w) * scale + shift); x:(B,M,K) bf16, w:(K,N) bf16."""
    B, M, K = x.shape
    N = w.shape[1]
    tm, mp = _pick_tile(M, tm_cap)
    if mp != M:
        x = jnp.pad(x, ((0, 0), (0, mp - M), (0, 0)))
    out = pl.pallas_call(
        functools.partial(_matmul_affine_kernel, act=act),
        out_shape=jax.ShapeDtypeStruct((B, mp, N), out_dtype),
        grid=(B, mp // tm),
        in_specs=[
            pl.BlockSpec((pl.Squeezed(), tm, K), lambda b, m: (b, m, 0)),
            pl.BlockSpec((K, N), lambda b, m: (0, 0)),          # resident weights
            pl.BlockSpec((1, N), lambda b, m: (0, 0)),
            pl.BlockSpec((1, N), lambda b, m: (0, 0)),
        ],
        out_specs=pl.BlockSpec((pl.Squeezed(), tm, N), lambda b, m: (b, m, 0)),
        compiler_params=pltpu.CompilerParams(
            dimension_semantics=("parallel", "parallel")),
    )(x, w, scale.reshape(1, N).astype(jnp.float32),
      shift.reshape(1, N).astype(jnp.float32))
    return out[:, :M, :] if mp != M else out


def matmul_affine_proj(x, w1, scale, shift, w2, b2, *, out_dtype, tm_cap=1024):
    """relu((x @ w1) * scale + shift) @ w2 + b2, all weights VMEM-resident."""
    B, M, K = x.shape
    N1, N2 = w1.shape[1], w2.shape[1]
    tm, mp = _pick_tile(M, tm_cap)
    if mp != M:
        x = jnp.pad(x, ((0, 0), (0, mp - M), (0, 0)))
    out = pl.pallas_call(
        _matmul_affine_proj_kernel,
        out_shape=jax.ShapeDtypeStruct((B, mp, N2), out_dtype),
        grid=(B, mp // tm),
        in_specs=[
            pl.BlockSpec((pl.Squeezed(), tm, K), lambda b, m: (b, m, 0)),
            pl.BlockSpec((K, N1), lambda b, m: (0, 0)),
            pl.BlockSpec((1, N1), lambda b, m: (0, 0)),
            pl.BlockSpec((1, N1), lambda b, m: (0, 0)),
            pl.BlockSpec((N1, N2), lambda b, m: (0, 0)),
            pl.BlockSpec((1, N2), lambda b, m: (0, 0)),
        ],
        out_specs=pl.BlockSpec((pl.Squeezed(), tm, N2), lambda b, m: (b, m, 0)),
        compiler_params=pltpu.CompilerParams(
            dimension_semantics=("parallel", "parallel")),
    )(x, w1, scale.reshape(1, N1).astype(jnp.float32),
      shift.reshape(1, N1).astype(jnp.float32),
      w2, b2.reshape(1, N2).astype(jnp.float32))
    return out[:, :M, :] if mp != M else out


def maxpool3x3_s2(x):
    """MaxPool2d(kernel=3, stride=2, padding=1), NHWC, via phase-split kernel."""
    B, H, W, C = x.shape
    ho = (H - 1) // 2 + 1
    wo = (W - 1) // 2 + 1
    hp, wp = ho + 1, wo + 1
    neg = float(jnp.finfo(x.dtype).min)
    xp = jnp.pad(x, ((0, 0), (1, 2 * hp - H - 1), (1, 2 * wp - W - 1), (0, 0)),
                 constant_values=neg)
    # space-to-depth: xp[b, 2i+py, 2j+px, c] -> phases[b, py*2+px, i, j, c]
    phases = xp.reshape(B, hp, 2, wp, 2, C).transpose(0, 2, 4, 1, 3, 5)
    phases = phases.reshape(B, 4, hp, wp, C)
    return pl.pallas_call(
        functools.partial(_maxpool_phase_kernel, ho=ho, wo=wo),
        out_shape=jax.ShapeDtypeStruct((B, ho, wo, C), x.dtype),
        grid=(B,),
        in_specs=[pl.BlockSpec((pl.Squeezed(), 4, hp, wp, C),
                               lambda b: (b, 0, 0, 0, 0))],
        out_specs=pl.BlockSpec((pl.Squeezed(), ho, wo, C),
                               lambda b: (b, 0, 0, 0)),
        compiler_params=pltpu.CompilerParams(dimension_semantics=("parallel",)),
    )(phases)


# -----------------------------------------------------------------------------
# JAX glue: im2col (taps folded into K), BN folding, layer wrappers
# -----------------------------------------------------------------------------
def _im2col(x, stride):
    """(B,H,W,Cin) -> (B, ho*wo, 9*Cin) bf16 with the 9 taps folded into K."""
    B, H, W, Cin = x.shape
    ho = (H - 1) // stride + 1
    wo = (W - 1) // stride + 1
    xp = jnp.pad(x, ((0, 0), (1, 1), (1, 1), (0, 0)))
    taps = [xp[:, ky:ky + stride * (ho - 1) + 1:stride,
               kx:kx + stride * (wo - 1) + 1:stride, :]
            for ky in range(3) for kx in range(3)]
    patches = jnp.concatenate(taps, axis=-1)               # (B, ho, wo, 9*Cin)
    return patches.reshape(B, ho * wo, 9 * Cin).astype(jnp.bfloat16), ho, wo


def _fold_bn(b, gamma, beta, mean, var, eps=1e-5):
    scale = gamma / jnp.sqrt(var + eps)
    shift = (b - mean) * scale + beta
    return scale, shift


def _conv_weight_mat(w_oihw):
    # (Cout, Cin, 3, 3) -> (9*Cin, Cout), row block t = ky*3 + kx (matches im2col)
    Cout, Cin = w_oihw.shape[0], w_oihw.shape[1]
    return jnp.transpose(w_oihw, (2, 3, 1, 0)).reshape(9 * Cin, Cout).astype(jnp.bfloat16)


def conv3x3_bn_relu(x, w, b, gamma, beta, mean, var, *, stride, eps=1e-5):
    """Conv2d(3x3, pad=1, bias) + SyncBatchNorm(eval) + ReLU, NHWC, bf16 out."""
    B = x.shape[0]
    Cout = w.shape[0]
    patches, ho, wo = _im2col(x, stride)
    scale, shift = _fold_bn(b, gamma, beta, mean, var, eps)
    y = matmul_affine(patches, _conv_weight_mat(w), scale, shift,
                      act="relu", out_dtype=jnp.bfloat16)
    return y.reshape(B, ho, wo, Cout)


def conv3x3_bn_relu_fc(x, conv_params, fc_w, fc_b, *, stride, eps=1e-5):
    """conv3 + BN + ReLU with fc3 (1x1 conv) fused in the epilogue.

    Returns (B, ho*wo, D) f32 tokens in (h, w) row-major order, matching
    torch's c3.view(bs, dim, -1).transpose(1, 2).
    """
    w, b, gamma, beta, mean, var = conv_params
    D, C3 = fc_w.shape[0], fc_w.shape[1]
    patches, ho, wo = _im2col(x, stride)
    scale, shift = _fold_bn(b, gamma, beta, mean, var, eps)
    w2 = fc_w.reshape(D, C3).T.astype(jnp.bfloat16)        # (C3, D)
    return matmul_affine_proj(patches, _conv_weight_mat(w), scale, shift,
                              w2, fc_b, out_dtype=jnp.float32)


# -----------------------------------------------------------------------------
# SpatialPriorModule: params + forward
# -----------------------------------------------------------------------------
def init_params(key, inplanes=64, embed_dim=384):
    def conv_block(k, cin, cout):
        kw, kb, kg, kbeta, km, kv = jax.random.split(k, 6)
        fan_in = cin * 9
        return (
            jax.random.normal(kw, (cout, cin, 3, 3), jnp.float32) / jnp.sqrt(fan_in),
            jax.random.normal(kb, (cout,), jnp.float32) * 0.1,
            jax.random.uniform(kg, (cout,), jnp.float32, 0.5, 1.5),   # bn gamma
            jax.random.normal(kbeta, (cout,), jnp.float32) * 0.1,     # bn beta
            jax.random.normal(km, (cout,), jnp.float32) * 0.1,        # running mean
            jax.random.uniform(kv, (cout,), jnp.float32, 0.5, 1.5),   # running var
        )

    ks = jax.random.split(key, 8)
    return {
        "stem1": conv_block(ks[0], 3, inplanes),
        "stem2": conv_block(ks[1], inplanes, inplanes),
        "stem3": conv_block(ks[2], inplanes, inplanes),
        "conv2": conv_block(ks[3], inplanes, 2 * inplanes),
        "conv3": conv_block(ks[4], 2 * inplanes, 4 * inplanes),
        "fc3_w": jax.random.normal(ks[5], (embed_dim, 4 * inplanes, 1, 1),
                                   jnp.float32) / jnp.sqrt(4 * inplanes),
        "fc3_b": jax.random.normal(ks[6], (embed_dim,), jnp.float32) * 0.1,
        "dense3_w": jax.random.normal(ks[7], (embed_dim, embed_dim),
                                      jnp.float32) / jnp.sqrt(embed_dim),
        "dense3_b": jnp.linspace(-0.1, 0.1, embed_dim, dtype=jnp.float32),
        "cls_token": jnp.zeros((1, 1, embed_dim), jnp.float32),
    }


def spatial_prior_forward(x_nchw, params):
    p = params
    x = jnp.transpose(x_nchw, (0, 2, 3, 1)).astype(jnp.bfloat16)   # NCHW -> NHWC

    c1 = conv3x3_bn_relu(x, *p["stem1"], stride=2)
    c1 = conv3x3_bn_relu(c1, *p["stem2"], stride=1)
    c1 = conv3x3_bn_relu(c1, *p["stem3"], stride=1)
    c1 = maxpool3x3_s2(c1)
    c2 = conv3x3_bn_relu(c1, *p["conv2"], stride=2)
    # conv3 + fc3 fused: tokens straight out of the kernel, no c3 HBM round trip
    c3_tok = conv3x3_bn_relu_fc(c2, p["conv3"], p["fc3_w"], p["fc3_b"], stride=2)

    B = x.shape[0]
    D = p["fc3_w"].shape[0]
    # dense3(cls_token) + tanh: M=1 GEMV -> plain XLA (a dedicated pallas_call
    # would be launch/DMA-overhead dominated).
    cls = jnp.broadcast_to(p["cls_token"], (B, 1, D)).astype(jnp.float32)
    pooled = jnp.tanh(cls @ p["dense3_w"].T + p["dense3_b"])

    return jnp.concatenate([pooled, c3_tok], axis=1)   # (B, 1 + H3*W3, D)


# -----------------------------------------------------------------------------
# Pure-JAX f32 reference (correctness check)
# -----------------------------------------------------------------------------
def _ref_conv_bn_relu(x, w, b, g, beta, mean, var, stride, eps=1e-5):
    y = lax.conv_general_dilated(
        x, jnp.transpose(w, (2, 3, 1, 0)), (stride, stride),
        ((1, 1), (1, 1)), dimension_numbers=("NHWC", "HWIO", "NHWC"))
    y = y + b
    return jnp.maximum((y - mean) / jnp.sqrt(var + eps) * g + beta, 0.0)


def _ref_forward(x_nchw, p):
    x = jnp.transpose(x_nchw, (0, 2, 3, 1))
    c1 = _ref_conv_bn_relu(x, *p["stem1"], 2)
    c1 = _ref_conv_bn_relu(c1, *p["stem2"], 1)
    c1 = _ref_conv_bn_relu(c1, *p["stem3"], 1)
    c1 = lax.reduce_window(c1, -jnp.inf, lax.max, (1, 3, 3, 1), (1, 2, 2, 1),
                           ((0, 0), (1, 1), (1, 1), (0, 0)))
    c2 = _ref_conv_bn_relu(c1, *p["conv2"], 2)
    c3 = _ref_conv_bn_relu(c2, *p["conv3"], 2)
    B, H3, W3, C3 = c3.shape
    D = p["fc3_w"].shape[0]
    c3 = c3.reshape(B, H3 * W3, C3) @ p["fc3_w"].reshape(D, C3).T + p["fc3_b"]
    cls = jnp.broadcast_to(p["cls_token"], (B, 1, D))
    pooled = jnp.tanh(cls @ p["dense3_w"].T + p["dense3_b"])
    return jnp.concatenate([pooled, c3], axis=1)


# -----------------------------------------------------------------------------
if __name__ == "__main__":
    inplanes, embed_dim = 8, 32
    B, H, W = 2, 32, 32

    x = jax.random.normal(jax.random.PRNGKey(0), (B, 3, H, W), jnp.float32)
    params = init_params(jax.random.PRNGKey(42), inplanes, embed_dim)

    out = jax.block_until_ready(spatial_prior_forward(x, params))
    ref = jax.block_until_ready(_ref_forward(x, params))

    assert out.shape == (B, 1 + (H // 16) * (W // 16), embed_dim), out.shape
    # bf16 matmul inputs + bf16 intermediate activations vs f32 reference ->
    # looser tolerance (a real indexing/fold bug would be O(1) off).
    err = float(jnp.max(jnp.abs(out - ref)))
    mag = float(jnp.max(jnp.abs(ref)))
    assert err <= 0.08 * mag + 0.1, (err, mag)

    print("KERNEL_OK")
</pallas_src>

<mosaic_0001>
module attributes {stable_mosaic.version = 11 : i64} {
  func.func @_matmul_affine_kernel(%arg0: i32, %arg1: i32, %arg2: memref<1x256x27xbf16, #tpu.memory_space<vmem>>, %arg3: memref<27x8xbf16, #tpu.memory_space<vmem>>, %arg4: memref<1x8xf32, #tpu.memory_space<vmem>>, %arg5: memref<1x8xf32, #tpu.memory_space<vmem>>, %arg6: memref<1x256x8xbf16, #tpu.memory_space<vmem>>) attributes {dimension_semantics = [#tpu.dimension_semantics<parallel>, #tpu.dimension_semantics<parallel>], iteration_bounds = array<i64: 2, 1>, scalar_prefetch = 0 : i64, scratch_operands = 0 : i64, tpu.core_type = #tpu.core_type<tc>, window_params = [{transform_indices = @transform_0, window_bounds = array<i64: 1, 256, 27>}, {pipeline_mode = #tpu.pipeline_mode<synchronous>, transform_indices = @transform_1, window_bounds = array<i64: 27, 8>}, {pipeline_mode = #tpu.pipeline_mode<synchronous>, transform_indices = @transform_2, window_bounds = array<i64: 1, 8>}, {pipeline_mode = #tpu.pipeline_mode<synchronous>, transform_indices = @transform_3, window_bounds = array<i64: 1, 8>}, {transform_indices = @transform_4, window_bounds = array<i64: 1, 256, 8>}]} {
    %c0 = arith.constant 0 : index
    %c0_0 = arith.constant 0 : index
    %c0_1 = arith.constant 0 : index
    %0 = vector.load %arg2[%c0, %c0_0, %c0_1] : memref<1x256x27xbf16, #tpu.memory_space<vmem>>, vector<1x256x27xbf16>
    %1 = vector.shape_cast %0 : vector<1x256x27xbf16> to vector<256x27xbf16>
    %c0_2 = arith.constant 0 : index
    %c0_3 = arith.constant 0 : index
    %2 = vector.load %arg3[%c0_2, %c0_3] : memref<27x8xbf16, #tpu.memory_space<vmem>>, vector<27x8xbf16>
    %cst = arith.constant dense<0.000000e+00> : vector<256x8xf32>
    %3 = tpu.matmul %1, %2, %cst {dimension_numbers = #tpu.dot_dimension_numbers<[1], [0], [0], [1], [0, 0, 1, 1], [], []>} : vector<256x27xbf16>, vector<27x8xbf16>, vector<256x8xf32> -> vector<256x8xf32>
    %c0_4 = arith.constant 0 : index
    %c0_5 = arith.constant 0 : index
    %4 = vector.load %arg4[%c0_4, %c0_5] : memref<1x8xf32, #tpu.memory_space<vmem>>, vector<1x8xf32>
    %5 = vector.broadcast %4 : vector<1x8xf32> to vector<256x8xf32>
    %6 = arith.mulf %3, %5 : vector<256x8xf32>
    %c0_6 = arith.constant 0 : index
    %c0_7 = arith.constant 0 : index
    %7 = vector.load %arg5[%c0_6, %c0_7] : memref<1x8xf32, #tpu.memory_space<vmem>>, vector<1x8xf32>
    %8 = vector.broadcast %7 : vector<1x8xf32> to vector<256x8xf32>
    %9 = arith.addf %6, %8 : vector<256x8xf32>
    %cst_8 = arith.constant 0.000000e+00 : f32
    %10 = vector.broadcast %cst_8 : f32 to vector<256x8xf32>
    %11 = arith.maximumf %9, %10 : vector<256x8xf32>
    %12 = arith.truncf %11 : vector<256x8xf32> to vector<256x8xbf16>
    %c0_9 = arith.constant 0 : index
    %c0_10 = arith.constant 0 : index
    %c0_11 = arith.constant 0 : index
    %13 = vector.load %arg6[%c0_9, %c0_10, %c0_11] : memref<1x256x8xbf16, #tpu.memory_space<vmem>>, vector<1x256x8xbf16>
    %14 = vector.shape_cast %13 : vector<1x256x8xbf16> to vector<256x8xbf16>
    %15 = vector.shape_cast %12 : vector<256x8xbf16> to vector<1x256x8xbf16>
    tpu.vector_store %arg6[%c0_9, %c0_10, %c0_11], %15 {strides = array<i32>} : memref<1x256x8xbf16, #tpu.memory_space<vmem>>, vector<1x256x8xbf16>,
    return
  }
  func.func @transform_0(%arg0: i32, %arg1: i32) -> (i32, i32, i32) {
    %c0_i32 = arith.constant 0 : i32
    %c0_i32_0 = arith.constant 0 : i32
    return %arg0, %arg1, %c0_i32 : i32, i32, i32
  }
  func.func @transform_1(%arg0: i32, %arg1: i32) -> (i32, i32) {
    %c0_i32 = arith.constant 0 : i32
    %c0_i32_0 = arith.constant 0 : i32
    %c0_i32_1 = arith.constant 0 : i32
    return %c0_i32, %c0_i32_0 : i32, i32
  }
  func.func @transform_2(%arg0: i32, %arg1: i32) -> (i32, i32) {
    %c0_i32 = arith.constant 0 : i32
    %c0_i32_0 = arith.constant 0 : i32
    %c0_i32_1 = arith.constant 0 : i32
    return %c0_i32, %c0_i32_0 : i32, i32
  }
  func.func @transform_3(%arg0: i32, %arg1: i32) -> (i32, i32) {
    %c0_i32 = arith.constant 0 : i32
    %c0_i32_0 = arith.constant 0 : i32
    %c0_i32_1 = arith.constant 0 : i32
    return %c0_i32, %c0_i32_0 : i32, i32
  }
  func.func @transform_4(%arg0: i32, %arg1: i32) -> (i32, i32, i32) {
    %c0_i32 = arith.constant 0 : i32
    %c0_i32_0 = arith.constant 0 : i32
    return %arg0, %arg1, %c0_i32 : i32, i32, i32
  }
}

</mosaic_0001>

<bundles_post_ra>
// kernel: tpu_custom_call.1
= control target key start
LH: loop header
LB: loop body
LE: loop exit
PB: predicated region body
PF: predicated region fallthrough
CT: control target
= control target key end

     0   :  { %s1204_s15 = smov 0   ;;  %s1206_s16 = smov 0   ;;  %s1424_s0 = inlined_call_operand.vmem [shape: bf16[2,256,27], index: 0, kind: input, shape index: {}]   ;;  %s1425_s1 = inlined_call_operand.vmem [shape: bf16[27,8], index: 1, kind: input, shape index: {}]   ;;  %s1426_s2 = inlined_call_operand.vmem [shape: f32[1,8], index: 2, kind: input, shape index: {}]   ;;  %s1427_s3 = inlined_call_operand.vmem [shape: f32[1,8], index: 3, kind: input, shape index: {}]   ;;  %s1428_s4 = inlined_call_operand.vmem [shape: bf16[2,256,8], index: 4, kind: output, shape index: {}]  }
   0x1   :  { %s1208_s17 = smov 0  }
   0x2 LB: > { %s26_s18 = sadd.s32 1, %s1172_s16  ;;  %p944_p0 = scmp.ge.s32.totalorder %s1176_s17, 1  ;;  %s1176_s17 = sphi %s1208_s17, %s14_s17   ;;  %s1172_s16 = sphi %s1206_s16, %s1430_s16   ;;  %s1168_s15 = sphi %s1204_s15, %s1429_s15  }
   0x3   : > { %p28_p1 = scmp.ge.s32.totalorder %s26_s18, 2  ;;  %p183_p2 = scmp.lt.s32.totalorder %s1176_s17, 3 }
   0x5   : > { %s1432_s18 = smov (%p28_p1, %s26_s18), 0  ;;  %p184_p3 = pnand %p944_p0, %p183_p2 }
   0x6   : > { %v1136_v0 = vld [vmem:[%s1425_s1] sm:$0xff] (!%p184_p3)   ;;  %vm414_vm0 = vcmask (!%p184_p3), 1044480   ;;  %v1137_v1 = vld [vmem:[%s1425_s1 + $0x8] sm:$0x3f] (!%p184_p3)   ;;  %vm415_vm1 = vcmask (!%p184_p3), 1045504   ;;  %p218_p4 = scmp.lt.s32.totalorder (!%p184_p3), %s1168_s15, 1 }
   0x7   : > { %187 = sbr.rel (%p184_p3) target bundleno = 270 (0x10e), region = 36  ;;  %1071 = vmatprep.subr.bf16.mxu0 (!%p184_p3), %v1136_v0  ;;  %1107 = vmatprep.subr.bf16.mxu1 (!%p184_p3), %v1136_v0  ;;  %v1178_v2 = vmov (!%p184_p3), 65535   ;;  %vm365_vm2 = vcmask (!%p184_p3), 220160   ;;  %v1273_v22 = vld [vmem:[%s1426_s2] ss:$0 sm:$0xff] (!%p184_p3)  ;;  %vm820_vm3 = vcmask (!%p184_p3), 60416  }
   0x8   : > { %1072 = vmatpush3.bf16.msra.mxu0 (!%p184_p3), %v1136_v0  ;;  %1109 = vmatpush3.bf16.msra.mxu1 (!%p184_p3), %v1136_v0  ;;  %v416_v3 = vsel (!%p184_p3), %vm414_vm0, 4294967295, %v1178_v2  ;;  %v1278_v24 = vld [vmem:[%s1427_s3] ss:$0 sm:$0xff] (!%p184_p3) }
   0x9   : > { %v417_v4 = vsel (!%p184_p3), %vm415_vm1, %v416_v3, 0 }
   0xa   : > { %v419_v5 = vand.u32 (!%p184_p3), %v1137_v1, %v417_v4 }
   0xc   : > { %1073 = vmatprep.subr.bf16.mxu0 (!%p184_p3), %v419_v5  ;;  %1108 = vmatprep.subr.bf16.mxu1 (!%p184_p3), %v419_v5 }
   0xd   : > { %1074 = vmatpush3.bf16.msra.mxu0 (!%p184_p3), %v419_v5  ;;  %1110 = vmatpush3.bf16.msra.mxu1 (!%p184_p3), %v419_v5 }
   0xe   : > { %s1434_s15 = smov (!%p218_p4, %s1168_s15), 1 }
   0xf   : > { %s1019_s23 = sshll.u32 %s1434_s15, 7 }
  0x10   : > { %s1236_s26 = scalar_lea.vmem %s1424_s0, %s1019_s23  ;;  %s1298_s7 = scalar_lea.vmem %s1428_s4, %s1019_s23 }
  0x11   : > { %v1138_v6 = vld [vmem:[%s1236_s26] sm:$0xff]   ;;  %v1140_v8 = vld [vmem:[%s1236_s26 + $0x8] sm:$0xff]   ;;  %v1142_v10 = vld [vmem:[%s1236_s26 + $0x10] sm:$0xff]  }
  0x12   : > { %v1139_v7 = vld [vmem:[%s1236_s26 + $0x40] sm:$0xff]   ;;  %1075 = vmatprep.mubr.msk.bf16.mxu0 %vm365_vm2, %v1138_v6  ;;  %v1141_v9 = vld [vmem:[%s1236_s26 + $0x48] sm:$0xff]   ;;  %v1143_v11 = vld [vmem:[%s1236_s26 + $0x50] sm:$0xff]  }
  0x13   : > { %1091 = vmatprep.mubr.msk.bf16.mxu1 %vm365_vm2, %v1139_v7  ;;  %1076 = vmatmul.mubr.msk.bf16.vlgmr.msra.gmra.mrb[0].mxu0 %vm365_vm2, %v1140_v8  ;;  %v1144_v12 = vld [vmem:[%s1236_s26 + $0x18] sm:$0xff]   ;;  %v1146_v14 = vld [vmem:[%s1236_s26 + $0x20] sm:$0xff]   ;;  %v1148_v16 = vld [vmem:[%s1236_s26 + $0x28] sm:$0xff]  }
  0x14   : > { %1092 = vmatmul.mubr.msk.bf16.vlgmr.msra.gmra.mrb[0].mxu1 %vm365_vm2, %v1141_v9  ;;  %1079 = vmatprep.mubr.msk.bf16.mxu0 %vm365_vm2, %v1142_v10  ;;  %v1145_v13 = vld [vmem:[%s1236_s26 + $0x58] sm:$0xff]   ;;  %v1147_v15 = vld [vmem:[%s1236_s26 + $0x60] sm:$0xff]   ;;  %v1149_v17 = vld [vmem:[%s1236_s26 + $0x68] sm:$0xff]  }
  0x15   : > { %1095 = vmatprep.mubr.msk.bf16.mxu1 %vm365_vm2, %v1143_v11  ;;  %v1150_v18 = vld [vmem:[%s1236_s26 + $0x30] sm:$0xff]   ;;  %v1152_v20 = vld [vmem:[%s1236_s26 + $0x38] sm:$0xff]  }
  0x16   : > { %v1151_v19 = vld [vmem:[%s1236_s26 + $0x70] sm:$0xff]   ;;  %v1153_v21 = vld [vmem:[%s1236_s26 + $0x78] sm:$0xff]  }
  0x1b   : > { %1080 = vmatmul.mubr.msk.bf16.gmra.mrb[4].mxu0 %vm365_vm2, %v1144_v12 }
  0x1c   : > { %1096 = vmatmul.mubr.msk.bf16.gmra.mrb[4].mxu1 %vm365_vm2, %v1145_v13  ;;  %1083 = vmatprep.mubr.msk.bf16.mxu0 %vm365_vm2, %v1146_v14 }
  0x1d   : > { %1099 = vmatprep.mubr.msk.bf16.mxu1 %vm365_vm2, %v1147_v15 }
  0x23   : > { %1084 = vmatmul.mubr.msk.bf16.gmra.mrb[8].mxu0 %vm365_vm2, %v1148_v16 }
  0x24   : > { %1100 = vmatmul.mubr.msk.bf16.gmra.mrb[8].mxu1 %vm365_vm2, %v1149_v17  ;;  %1087 = vmatprep.mubr.msk.bf16.mxu0 %vm365_vm2, %v1150_v18 }
  0x25   : > { %1103 = vmatprep.mubr.msk.bf16.mxu1 %vm365_vm2, %v1151_v19 }
  0x2b   : > { %1088 = vmatmul.mubr.msk.bf16.gmra.mrb[12].mxu0 %vm365_vm2, %v1152_v20 }
  0x2c   : > { %1104 = vmatmul.mubr.msk.bf16.gmra.mrb[12].mxu1 %vm365_vm2, %v1153_v21 }
  0xe6   : > { %v1077_v23 = vpop.f32.mrb[0].mxu0 }
  0xe7   : > { %v591_v25 = vmul.f32 %v1077_v23, %v1273_v22  ;;  %v1093_v26 = vpop.f32.mrb[0].mxu1  ;;  %v455_v27 = vpop.f32.mrb[1].mxu0 }
  0xe8   : > { %v607_v28 = vmul.f32 %v1093_v26, %v1273_v22  ;;  %v589_v29 = vmul.f32 %v1273_v22, %v455_v27  ;;  %v519_v30 = vpop.f32.mrb[1].mxu1  ;;  %v1078_v31 = vpop.f32.mrb[2].mxu0 }
  0xe9   : > { %v630_v32 = vadd.f32 %v1278_v24, %v591_v25  ;;  %v605_v33 = vmul.f32 %v1273_v22, %v519_v30  ;;  %v592_v34 = vmul.f32 %v1078_v31, %v1273_v22  ;;  %v1094_v35 = vpop.f32.mrb[2].mxu1  ;;  %v458_v36 = vpop.f32.mrb[3].mxu0 }
  0xea   : > { %v646_v37 = vadd.f32 %v1278_v24, %v607_v28  ;;  %v628_v38 = vadd.f32 %v1278_v24, %v589_v29  ;;  %v608_v39 = vmul.f32 %v1094_v35, %v1273_v22  ;;  %v590_v40 = vmul.f32 %v1273_v22, %v458_v36  ;;  %v522_v41 = vpop.f32.mrb[3].mxu1 }
  0xeb   : > { %v662_v42 = vmax.f32 %v630_v32, 0.0  ;;  %v644_v43 = vadd.f32 %v1278_v24, %v605_v33  ;;  %v631_v44 = vadd.f32 %v1278_v24, %v592_v34  ;;  %v606_v45 = vmul.f32 %v1273_v22, %v522_v41 }
  0xec   : > { %v678_v46 = vmax.f32 %v646_v37, 0.0  ;;  %v660_v47 = vmax.f32 %v628_v38, 0.0  ;;  %v647_v48 = vadd.f32 %v1278_v24, %v608_v39  ;;  %v629_v49 = vadd.f32 %v1278_v24, %v590_v40 }
  0xed   : > { %v1023_v50 = vpack.c.bf16 %v662_v42, %v662_v42  ;;  %v676_v51 = vmax.f32 %v644_v43, 0.0  ;;  %v663_v52 = vmax.f32 %v631_v44, 0.0  ;;  %v645_v53 = vadd.f32 %v1278_v24, %v606_v45 }
  0xee   : > { %v1039_v54 = vpack.c.bf16 %v678_v46, %v678_v46  ;;  %v1021_v55 = vpack.c.bf16 %v660_v47, %v660_v47  ;;  %v679_v56 = vmax.f32 %v647_v48, 0.0  ;;  %v661_v57 = vmax.f32 %v629_v49, 0.0  ;;  %v1081_v58 = vpop.f32.mrb[4].mxu0 }
  0xef   : > { %823 = vst.msk [vmem:[%s1298_s7 + $0x8] sm:$0xf] %vm820_vm3, %v1023_v50  ;;  %v1037_v59 = vpack.c.bf16 %v676_v51, %v676_v51  ;;  %v1024_v60 = vpack.c.bf16 %v663_v52, %v663_v52  ;;  %v677_v61 = vmax.f32 %v645_v53, 0.0  ;;  %v595_v62 = vmul.f32 %v1081_v58, %v1273_v22  ;;  %v1097_v63 = vpop.f32.mrb[4].mxu1  ;;  %v471_v0 = vpop.f32.mrb[5].mxu0 }
  0xf0   : > { %839 = vst.msk [vmem:[%s1298_s7 + $0x48] sm:$0xf] %vm820_vm3, %v1039_v54  ;;  %821 = vst.msk [vmem:[%s1298_s7] sm:$0xf] %vm820_vm3, %v1021_v55  ;;  %v1040_v1 = vpack.c.bf16 %v679_v56, %v679_v56  ;;  %v1022_v2 = vpack.c.bf16 %v661_v57, %v661_v57  ;;  %v611_v3 = vmul.f32 %v1097_v63, %v1273_v22  ;;  %v535_v5 = vpop.f32.mrb[5].mxu1  ;;  %v1082_v6 = vpop.f32.mrb[6].mxu0 }
  0xf1   : > { %v593_v4 = vmul.f32 %v1273_v22, %v471_v0  ;;  %837 = vst.msk [vmem:[%s1298_s7 + $0x40] sm:$0xf] %vm820_vm3, %v1037_v59  ;;  %824 = vst.msk [vmem:[%s1298_s7 + $0xc] sm:$0xf] %vm820_vm3, %v1024_v60  ;;  %v1038_v7 = vpack.c.bf16 %v677_v61, %v677_v61  ;;  %v634_v8 = vadd.f32 %v1278_v24, %v595_v62  ;;  %v1098_v11 = vpop.f32.mrb[6].mxu1  ;;  %v474_v12 = vpop.f32.mrb[7].mxu0 }
  0xf2   : > { %v609_v9 = vmul.f32 %v1273_v22, %v535_v5  ;;  %v596_v10 = vmul.f32 %v1082_v6, %v1273_v22  ;;  %840 = vst.msk [vmem:[%s1298_s7 + $0x4c] sm:$0xf] %vm820_vm3, %v1040_v1  ;;  %822 = vst.msk [vmem:[%s1298_s7 + $0x4] sm:$0xf] %vm820_vm3, %v1022_v2  ;;  %v650_v13 = vadd.f32 %v1278_v24, %v611_v3  ;;  %v538_v17 = vpop.f32.mrb[7].mxu1 }
  0xf3   : > { %v632_v14 = vadd.f32 %v1278_v24, %v593_v4  ;;  %v612_v15 = vmul.f32 %v1098_v11, %v1273_v22  ;;  %v594_v16 = vmul.f32 %v1273_v22, %v474_v12  ;;  %838 = vst.msk [vmem:[%s1298_s7 + $0x44] sm:$0xf] %vm820_vm3, %v1038_v7  ;;  %v666_v18 = vmax.f32 %v634_v8, 0.0 }
  0xf4   : > { %v648_v19 = vadd.f32 %v1278_v24, %v609_v9  ;;  %v635_v20 = vadd.f32 %v1278_v24, %v596_v10  ;;  %v610_v21 = vmul.f32 %v1273_v22, %v538_v17  ;;  %v682_v23 = vmax.f32 %v650_v13, 0.0 }
  0xf5   : > { %v664_v25 = vmax.f32 %v632_v14, 0.0  ;;  %v651_v26 = vadd.f32 %v1278_v24, %v612_v15  ;;  %v633_v27 = vadd.f32 %v1278_v24, %v594_v16  ;;  %v1027_v28 = vpack.c.bf16 %v666_v18, %v666_v18 }
  0xf6   : > { %v680_v29 = vmax.f32 %v648_v19, 0.0  ;;  %v667_v30 = vmax.f32 %v635_v20, 0.0  ;;  %v649_v31 = vadd.f32 %v1278_v24, %v610_v21  ;;  %v1043_v32 = vpack.c.bf16 %v682_v23, %v682_v23  ;;  %v1085_v36 = vpop.f32.mrb[8].mxu0 }
  0xf7   : > { %v1025_v33 = vpack.c.bf16 %v664_v25, %v664_v25  ;;  %v683_v34 = vmax.f32 %v651_v26, 0.0  ;;  %v665_v35 = vmax.f32 %v633_v27, 0.0  ;;  %827 = vst.msk [vmem:[%s1298_s7 + $0x18] sm:$0xf] %vm820_vm3, %v1027_v28  ;;  %v599_v40 = vmul.f32 %v1085_v36, %v1273_v22  ;;  %v1101_v41 = vpop.f32.mrb[8].mxu1  ;;  %v487_v42 = vpop.f32.mrb[9].mxu0 }
  0xf8   : > { %v1041_v37 = vpack.c.bf16 %v680_v29, %v680_v29  ;;  %v1028_v38 = vpack.c.bf16 %v667_v30, %v667_v30  ;;  %v681_v39 = vmax.f32 %v649_v31, 0.0  ;;  %843 = vst.msk [vmem:[%s1298_s7 + $0x58] sm:$0xf] %vm820_vm3, %v1043_v32  ;;  %v615_v45 = vmul.f32 %v1101_v41, %v1273_v22  ;;  %v551_v47 = vpop.f32.mrb[9].mxu1  ;;  %v1086_v48 = vpop.f32.mrb[10].mxu0 }
  0xf9   : > { %825 = vst.msk [vmem:[%s1298_s7 + $0x10] sm:$0xf] %vm820_vm3, %v1025_v33  ;;  %v1044_v43 = vpack.c.bf16 %v683_v34, %v683_v34  ;;  %v1026_v44 = vpack.c.bf16 %v665_v35, %v665_v35  ;;  %v597_v46 = vmul.f32 %v1273_v22, %v487_v42  ;;  %v638_v50 = vadd.f32 %v1278_v24, %v599_v40  ;;  %v1102_v53 = vpop.f32.mrb[10].mxu1  ;;  %v490_v54 = vpop.f32.mrb[11].mxu0 }
  0xfa   : > { %841 = vst.msk [vmem:[%s1298_s7 + $0x50] sm:$0xf] %vm820_vm3, %v1041_v37  ;;  %828 = vst.msk [vmem:[%s1298_s7 + $0x1c] sm:$0xf] %vm820_vm3, %v1028_v38  ;;  %v1042_v49 = vpack.c.bf16 %v681_v39, %v681_v39  ;;  %v613_v51 = vmul.f32 %v1273_v22, %v551_v47  ;;  %v600_v52 = vmul.f32 %v1086_v48, %v1273_v22  ;;  %v554_v59 = vpop.f32.mrb[11].mxu1 }
  0xfb   : > { %844 = vst.msk [vmem:[%s1298_s7 + $0x5c] sm:$0xf] %vm820_vm3, %v1044_v43  ;;  %826 = vst.msk [vmem:[%s1298_s7 + $0x14] sm:$0xf] %vm820_vm3, %v1026_v44  ;;  %v654_v55 = vadd.f32 %v1278_v24, %v615_v45  ;;  %v636_v56 = vadd.f32 %v1278_v24, %v597_v46  ;;  %v616_v57 = vmul.f32 %v1102_v53, %v1273_v22  ;;  %v670_v60 = vmax.f32 %v638_v50, 0.0 }
  0xfc   : > { %v598_v58 = vmul.f32 %v1273_v22, %v490_v54  ;;  %842 = vst.msk [vmem:[%s1298_s7 + $0x54] sm:$0xf] %vm820_vm3, %v1042_v49  ;;  %v652_v61 = vadd.f32 %v1278_v24, %v613_v51  ;;  %v639_v62 = vadd.f32 %v1278_v24, %v600_v52  ;;  %v614_v63 = vmul.f32 %v1273_v22, %v554_v59 }
  0xfd   : > { %v686_v0 = vmax.f32 %v654_v55, 0.0  ;;  %v668_v1 = vmax.f32 %v636_v56, 0.0  ;;  %v655_v2 = vadd.f32 %v1278_v24, %v616_v57  ;;  %v1031_v4 = vpack.c.bf16 %v670_v60, %v670_v60 }
  0xfe   : > { %v637_v3 = vadd.f32 %v1278_v24, %v598_v58  ;;  %v684_v5 = vmax.f32 %v652_v61, 0.0  ;;  %v671_v6 = vmax.f32 %v639_v62, 0.0  ;;  %v653_v7 = vadd.f32 %v1278_v24, %v614_v63  ;;  %v1089_v12 = vpop.f32.mrb[12].mxu0 }
  0xff   : > { %v1047_v8 = vpack.c.bf16 %v686_v0, %v686_v0  ;;  %v1029_v9 = vpack.c.bf16 %v668_v1, %v668_v1  ;;  %v687_v10 = vmax.f32 %v655_v2, 0.0  ;;  %831 = vst.msk [vmem:[%s1298_s7 + $0x28] sm:$0xf] %vm820_vm3, %v1031_v4  ;;  %v603_v16 = vmul.f32 %v1089_v12, %v1273_v22  ;;  %v1105_v17 = vpop.f32.mrb[12].mxu1  ;;  %v503_v18 = vpop.f32.mrb[13].mxu0 }
 0x100   : > { %v669_v11 = vmax.f32 %v637_v3, 0.0  ;;  %v1045_v13 = vpack.c.bf16 %v684_v5, %v684_v5  ;;  %v1032_v14 = vpack.c.bf16 %v671_v6, %v671_v6  ;;  %v685_v15 = vmax.f32 %v653_v7, 0.0  ;;  %v567_v25 = vpop.f32.mrb[13].mxu1  ;;  %v1090_v26 = vpop.f32.mrb[14].mxu0 }
 0x101   : > { %847 = vst.msk [vmem:[%s1298_s7 + $0x68] sm:$0xf] %vm820_vm3, %v1047_v8  ;;  %829 = vst.msk [vmem:[%s1298_s7 + $0x20] sm:$0xf] %vm820_vm3, %v1029_v9  ;;  %v1048_v19 = vpack.c.bf16 %v687_v10, %v687_v10  ;;  %v619_v21 = vmul.f32 %v1105_v17, %v1273_v22  ;;  %v601_v23 = vmul.f32 %v1273_v22, %v503_v18  ;;  %v1106_v31 = vpop.f32.mrb[14].mxu1  ;;  %v506_v32 = vpop.f32.mrb[15].mxu0 }
 0x102   : > { %v1030_v20 = vpack.c.bf16 %v669_v11, %v669_v11  ;;  %845 = vst.msk [vmem:[%s1298_s7 + $0x60] sm:$0xf] %vm820_vm3, %v1045_v13  ;;  %832 = vst.msk [vmem:[%s1298_s7 + $0x2c] sm:$0xf] %vm820_vm3, %v1032_v14  ;;  %v1046_v27 = vpack.c.bf16 %v685_v15, %v685_v15  ;;  %v642_v28 = vadd.f32 %v1278_v24, %v603_v16  ;;  %v570_v37 = vpop.f32.mrb[15].mxu1 }
 0x103   : > { %v617_v29 = vmul.f32 %v1273_v22, %v567_v25  ;;  %v604_v30 = vmul.f32 %v1090_v26, %v1273_v22  ;;  %848 = vst.msk [vmem:[%s1298_s7 + $0x6c] sm:$0xf] %vm820_vm3, %v1048_v19  ;;  %v658_v33 = vadd.f32 %v1278_v24, %v619_v21  ;;  %v640_v34 = vadd.f32 %v1278_v24, %v601_v23 }
 0x104   : > { %830 = vst.msk [vmem:[%s1298_s7 + $0x24] sm:$0xf] %vm820_vm3, %v1030_v20  ;;  %v620_v35 = vmul.f32 %v1106_v31, %v1273_v22  ;;  %v602_v36 = vmul.f32 %v1273_v22, %v506_v32  ;;  %846 = vst.msk [vmem:[%s1298_s7 + $0x64] sm:$0xf] %vm820_vm3, %v1046_v27  ;;  %v674_v38 = vmax.f32 %v642_v28, 0.0  ;;  %v618_v41 = vmul.f32 %v1273_v22, %v570_v37 }
 0x105   : > { %v656_v39 = vadd.f32 %v1278_v24, %v617_v29  ;;  %v643_v40 = vadd.f32 %v1278_v24, %v604_v30  ;;  %v690_v42 = vmax.f32 %v658_v33, 0.0  ;;  %v672_v43 = vmax.f32 %v640_v34, 0.0 }
 0x106   : > { %v659_v44 = vadd.f32 %v1278_v24, %v620_v35  ;;  %v641_v45 = vadd.f32 %v1278_v24, %v602_v36  ;;  %v1035_v46 = vpack.c.bf16 %v674_v38, %v674_v38  ;;  %v657_v49 = vadd.f32 %v1278_v24, %v618_v41 }
 0x107   : > { %v688_v47 = vmax.f32 %v656_v39, 0.0  ;;  %v675_v48 = vmax.f32 %v643_v40, 0.0  ;;  %v1051_v50 = vpack.c.bf16 %v690_v42, %v690_v42  ;;  %v1033_v51 = vpack.c.bf16 %v672_v43, %v672_v43 }
 0x108   : > { %v691_v22 = vmax.f32 %v659_v44, 0.0  ;;  %v673_v52 = vmax.f32 %v641_v45, 0.0  ;;  %835 = vst.msk [vmem:[%s1298_s7 + $0x38] sm:$0xf] %vm820_vm3, %v1035_v46  ;;  %v689_v55 = vmax.f32 %v657_v49, 0.0 }
 0x109   : > { %v1049_v53 = vpack.c.bf16 %v688_v47, %v688_v47  ;;  %v1036_v54 = vpack.c.bf16 %v675_v48, %v675_v48  ;;  %851 = vst.msk [vmem:[%s1298_s7 + $0x78] sm:$0xf] %vm820_vm3, %v1051_v50  ;;  %833 = vst.msk [vmem:[%s1298_s7 + $0x30] sm:$0xf] %vm820_vm3, %v1033_v51 }
 0x10a   : > { %v1052_v56 = vpack.c.bf16 %v691_v22, %v691_v22  ;;  %v1034_v57 = vpack.c.bf16 %v673_v52, %v673_v52  ;;  %v1050_v24 = vpack.c.bf16 %v689_v55, %v689_v55 }
 0x10b   : > { %849 = vst.msk [vmem:[%s1298_s7 + $0x70] sm:$0xf] %vm820_vm3, %v1049_v53  ;;  %836 = vst.msk [vmem:[%s1298_s7 + $0x3c] sm:$0xf] %vm820_vm3, %v1036_v54 }
 0x10c   : > { %852 = vst.msk [vmem:[%s1298_s7 + $0x7c] sm:$0xf] %vm820_vm3, %v1052_v56  ;;  %834 = vst.msk [vmem:[%s1298_s7 + $0x34] sm:$0xf] %vm820_vm3, %v1034_v57 }
 0x10d   : > { %850 = vst.msk [vmem:[%s1298_s7 + $0x74] sm:$0xf] %vm820_vm3, %v1050_v24 }
 0x10e PF: > { %s14_s17 = sadd.s32 1, %s1176_s17   ;;  %s1429_s15 = smov %s1172_s16 }
 0x10f   : > { %p11_p5 = scmp.ge.s32.totalorder %s14_s17, 4   ;;  %s1430_s16 = smov %s1432_s18 }
 0x111   :  { %13 = sbr.rel (!%p11_p5) target bundleno = 2 (0x2), region = 66 }

</bundles_post_ra>
